<compile_context>
chip_gen: v5e
topology: v5e:2x2
jax: 0.10.0
libtpu: 0.0.40
codegen_flags: <defaults>
</compile_context>

<pallas_src>
import functools

import jax
import jax.numpy as jnp
from jax.experimental import pallas as pl
from jax.experimental.pallas import tpu as pltpu


def _label_smoothing_kernel(x_ref, tgt_ref, out_ref, m_sc, l_sc, s_sc, *,
                            confidence, smoothing, n_total, c_total,
                            tile_n, tile_c, n_ragged, c_ragged):
    i = pl.program_id(0)                       # batch tile (parallel)
    j = pl.program_id(1)                       # class tile (sequential reduction)
    nj = pl.num_programs(1)

    @pl.when(j == 0)
    def _init():
        m_sc[...] = jnp.full_like(m_sc, -jnp.inf)
        l_sc[...] = jnp.zeros_like(l_sc)
        s_sc[...] = jnp.zeros_like(s_sc)

    x = x_ref[...].astype(jnp.float32)         # (tile_n, tile_c)
    tn, tc = x.shape

    # Global class index of each lane in this block.
    col = jax.lax.broadcasted_iota(jnp.int32, (tn, tc), 1) + j * tile_c

    if c_ragged:
        # Ragged last class tile: padded columns hold garbage.
        col_ok = col < c_total
        x_lse = jnp.where(col_ok, x, -jnp.inf)   # exp() contribution -> 0
        x_sum = jnp.where(col_ok, x, 0.0)        # weighted-sum contribution -> 0
    else:
        x_lse = x
        x_sum = x

    # --- online logsumexp across class tiles (per row) ---
    m_prev = m_sc[...]                                                   # (tn, 1)
    m_new = jnp.maximum(m_prev, jnp.max(x_lse, axis=-1, keepdims=True))  # (tn, 1)
    l_sc[...] = (l_sc[...] * jnp.exp(m_prev - m_new)
                 + jnp.sum(jnp.exp(x_lse - m_new), axis=-1, keepdims=True))
    m_sc[...] = m_new

    # --- fused gather + mean: one weighted reduction per class tile ---
    #   confidence * x[target] + smoothing * mean(x) = sum(x * w),
    #   w = smoothing/C + confidence * onehot(target)      (no dynamic gather on TPU)
    tgt = tgt_ref[...]                                                   # (tn, 1) i32
    base = jnp.float32(smoothing / c_total)
    w = jnp.where(col == tgt, jnp.float32(confidence) + base, base)      # (tn, tc)
    s_sc[...] += jnp.sum(x_sum * w, axis=-1, keepdims=True)

    @pl.when(j == nj - 1)
    def _finalize():
        lse = m_sc[...] + jnp.log(l_sc[...])                             # (tn, 1)
        loss_rows = (confidence + smoothing) * lse - s_sc[...]           # (tn, 1)
        if n_ragged:
            # Only needed when N % TILE_N != 0; true select drops NaN/Inf that the
            # reductions may have produced on garbage padded rows.
            row = jax.lax.broadcasted_iota(jnp.int32, (tn, 1), 0) + i * tile_n
            loss_rows = jnp.where(row < n_total, loss_rows, 0.0)
        partial = jnp.sum(loss_rows)
        # Lane-dense, (8,128)-aligned per-batch-tile partial (summed in the wrapper).
        out_ref[...] = jnp.broadcast_to(partial, out_ref.shape)


def _pick_tiles(n, c, itemsize, x_budget_bytes):
    """Largest (TILE_N, TILE_C) x block within the per-tile VMEM budget."""
    sub = 16 if itemsize == 2 else 8           # sublane packing granularity
    lane = 128

    def clamp_rows(t):
        if t >= n:
            return n                           # full-dim block is always legal
        return max(sub, (t // sub) * sub)

    # Option 1: keep the full class dim in one block; pick the largest row tile.
    rows_full_c = x_budget_bytes // max(1, c * itemsize)
    if rows_full_c >= min(n, 512):
        return clamp_rows(rows_full_c), c

    # Option 2 (vocab-scale C): tile the class dim, keep >= 512 rows (or all of N).
    tile_n = clamp_rows(512)
    tile_c = x_budget_bytes // max(1, tile_n * itemsize)
    if tile_c >= c:
        tile_c = c
    else:
        tile_c = max(lane, (tile_c // lane) * lane)
    return tile_n, tile_c


def label_smoothing_loss(x, target, smoothing=0.1, *, tile_n=None, tile_c=None):
    """x: (N, C) float logits, target: (N,) int labels. Returns scalar f32 loss."""
    n, c = x.shape
    confidence = 1.0 - smoothing
    tgt2d = target.astype(jnp.int32).reshape(n, 1)
    itemsize = jnp.dtype(x.dtype).itemsize

    # Generation-aware VMEM budgeting (v7x: 64 MiB/TC; v5e/v6e: 128 MiB physical).
    try:
        vmem_cap = int(pltpu.get_tpu_info().vmem_capacity_bytes)
    except Exception:
        vmem_cap = 128 * 1024 * 1024
    if vmem_cap <= 96 * 1024 * 1024:           # v7x-class: keep headroom for 2x buffering
        x_budget = 14 * 1024 * 1024
        vmem_limit = 44 * 1024 * 1024
    else:                                      # v5e / v6e
        x_budget = 20 * 1024 * 1024
        vmem_limit = 64 * 1024 * 1024

    auto_n, auto_c = _pick_tiles(n, c, itemsize, x_budget)
    tile_n = auto_n if tile_n is None else tile_n
    tile_c = auto_c if tile_c is None else tile_c

    grid_n = pl.cdiv(n, tile_n)
    grid_c = pl.cdiv(c, tile_c)

    kernel = functools.partial(
        _label_smoothing_kernel,
        confidence=confidence, smoothing=smoothing,
        n_total=n, c_total=c, tile_n=tile_n, tile_c=tile_c,
        n_ragged=(n % tile_n) != 0, c_ragged=(c % tile_c) != 0)

    partials = pl.pallas_call(
        kernel,
        out_shape=jax.ShapeDtypeStruct((grid_n, 8, 128), jnp.float32),
        grid_spec=pltpu.PrefetchScalarGridSpec(
            num_scalar_prefetch=0,
            grid=(grid_n, grid_c),
            in_specs=[
                pl.BlockSpec((tile_n, tile_c), lambda i, j: (i, j)),  # streamed logits
                pl.BlockSpec((tile_n, 1), lambda i, j: (i, 0)),       # targets (resident over j)
            ],
            out_specs=pl.BlockSpec((1, 8, 128), lambda i, j: (i, 0, 0)),
            scratch_shapes=[
                pltpu.VMEM((tile_n, 1), jnp.float32),   # running max  m
                pltpu.VMEM((tile_n, 1), jnp.float32),   # running sumexp l
                pltpu.VMEM((tile_n, 1), jnp.float32),   # running weighted sum s
            ],
        ),
        compiler_params=pltpu.CompilerParams(
            dimension_semantics=("parallel", "arbitrary"),
            vmem_limit_bytes=vmem_limit,
        ),
    )(x, tgt2d)

    return jnp.sum(partials[:, 0, 0]) * jnp.float32(1.0 / n)


def _reference(x, target, smoothing=0.1):
    confidence = 1.0 - smoothing
    logprobs = jax.nn.log_softmax(x.astype(jnp.float32), axis=-1)
    nll = -jnp.take_along_axis(logprobs, target[:, None], axis=-1)[:, 0]
    smooth = -jnp.mean(logprobs, axis=-1)
    return jnp.mean(confidence * nll + smoothing * smooth)


if __name__ == "__main__":
    key = jax.random.PRNGKey(0)
    kx, kt = jax.random.split(key)

    N, C = 20, 200            # ragged vs forced (8, 128) tiles in both axes
    smoothing = 0.1

    x = jax.random.normal(kx, (N, C), dtype=jnp.float32)
    target = jax.random.randint(kt, (N,), 0, C, dtype=jnp.int32)

    ref = _reference(x, target, smoothing=smoothing)

    # Auto tile selection: single full-C block, no masking emitted.
    loss_auto = jax.block_until_ready(
        label_smoothing_loss(x, target, smoothing=smoothing))
    # Forced small tiles: exercises batch tiling + C-tiled online logsumexp,
    # including the ragged row (20 % 8) and ragged column (200 % 128) masks.
    loss_tiled = jax.block_until_ready(
        label_smoothing_loss(x, target, smoothing=smoothing, tile_n=8, tile_c=128))

    assert jnp.allclose(loss_auto, ref, atol=1e-4, rtol=1e-5), (loss_auto, ref)
    assert jnp.allclose(loss_tiled, ref, atol=1e-4, rtol=1e-5), (loss_tiled, ref)

    print("KERNEL_OK")
</pallas_src>

<mosaic_0001>
module attributes {stable_mosaic.version = 11 : i64} {
  func.func @_label_smoothing_kernel(%arg0: i32, %arg1: i32, %arg2: memref<20x200xf32, #tpu.memory_space<vmem>>, %arg3: memref<20x1xi32, #tpu.memory_space<vmem>>, %arg4: memref<1x8x128xf32, #tpu.memory_space<vmem>>, %arg5: memref<20x1xf32, #tpu.memory_space<vmem>>, %arg6: memref<20x1xf32, #tpu.memory_space<vmem>>, %arg7: memref<20x1xf32, #tpu.memory_space<vmem>>) attributes {dimension_semantics = [#tpu.dimension_semantics<parallel>, #tpu.dimension_semantics<arbitrary>], iteration_bounds = array<i64: 1, 1>, scalar_prefetch = 0 : i64, scratch_operands = 3 : i64, tpu.core_type = #tpu.core_type<tc>, window_params = [{transform_indices = @transform_0, window_bounds = array<i64: 20, 200>}, {transform_indices = @transform_1, window_bounds = array<i64: 20, 1>}, {transform_indices = @transform_2, window_bounds = array<i64: 1, 8, 128>}]} {
    %c0_i32 = arith.constant 0 : i32
    %0 = arith.cmpi eq, %arg1, %c0_i32 : i32
    %1 = arith.extui %0 : i1 to i32
    %c0_i32_0 = arith.constant 0 : i32
    %2 = arith.cmpi ne, %1, %c0_i32_0 : i32
    scf.if %2 {
      %cst_23 = arith.constant 0xFF800000 : f32
      %40 = vector.broadcast %cst_23 : f32 to vector<20x1xf32>
      %c0_24 = arith.constant 0 : index
      %c0_25 = arith.constant 0 : index
      %41 = vector.load %arg5[%c0_24, %c0_25] : memref<20x1xf32, #tpu.memory_space<vmem>>, vector<20x1xf32>
      tpu.vector_store %arg5[%c0_24, %c0_25], %40 {strides = array<i32>} : memref<20x1xf32, #tpu.memory_space<vmem>>, vector<20x1xf32>,
      %cst_26 = arith.constant 0.000000e+00 : f32
      %42 = vector.broadcast %cst_26 : f32 to vector<20x1xf32>
      %c0_27 = arith.constant 0 : index
      %c0_28 = arith.constant 0 : index
      %43 = vector.load %arg6[%c0_27, %c0_28] : memref<20x1xf32, #tpu.memory_space<vmem>>, vector<20x1xf32>
      tpu.vector_store %arg6[%c0_27, %c0_28], %42 {strides = array<i32>} : memref<20x1xf32, #tpu.memory_space<vmem>>, vector<20x1xf32>,
      %cst_29 = arith.constant 0.000000e+00 : f32
      %44 = vector.broadcast %cst_29 : f32 to vector<20x1xf32>
      %c0_30 = arith.constant 0 : index
      %c0_31 = arith.constant 0 : index
      %45 = vector.load %arg7[%c0_30, %c0_31] : memref<20x1xf32, #tpu.memory_space<vmem>>, vector<20x1xf32>
      tpu.vector_store %arg7[%c0_30, %c0_31], %44 {strides = array<i32>} : memref<20x1xf32, #tpu.memory_space<vmem>>, vector<20x1xf32>,
    } else {
    }
    %c0 = arith.constant 0 : index
    %c0_1 = arith.constant 0 : index
    %3 = vector.load %arg2[%c0, %c0_1] : memref<20x200xf32, #tpu.memory_space<vmem>>, vector<20x200xf32>
    %4 = tpu.iota {dimensions = array<i32: 1>} : vector<20x200xi32>
    %c200_i32 = arith.constant 200 : i32
    %5 = arith.muli %arg1, %c200_i32 : i32
    %6 = vector.broadcast %5 : i32 to vector<20x200xi32>
    %7 = arith.addi %4, %6 : vector<20x200xi32>
    %c0_2 = arith.constant 0 : index
    %c0_3 = arith.constant 0 : index
    %8 = vector.load %arg5[%c0_2, %c0_3] : memref<20x1xf32, #tpu.memory_space<vmem>>, vector<20x1xf32>
    %cst = arith.constant dense<0xFF800000> : vector<20xf32>
    %9 = vector.multi_reduction <maximumf>, %3, %cst [1] : vector<20x200xf32> to vector<20xf32>
    %10 = vector.shape_cast %9 : vector<20xf32> to vector<20x1xf32>
    %11 = arith.maximumf %8, %10 : vector<20x1xf32>
    %c0_4 = arith.constant 0 : index
    %c0_5 = arith.constant 0 : index
    %12 = vector.load %arg6[%c0_4, %c0_5] : memref<20x1xf32, #tpu.memory_space<vmem>>, vector<20x1xf32>
    %13 = arith.subf %8, %11 : vector<20x1xf32>
    %14 = math.exp %13 : vector<20x1xf32>
    %15 = arith.mulf %12, %14 : vector<20x1xf32>
    %16 = vector.broadcast %11 : vector<20x1xf32> to vector<20x200xf32>
    %17 = arith.subf %3, %16 : vector<20x200xf32>
    %18 = math.exp %17 : vector<20x200xf32>
    %cst_6 = arith.constant dense<0.000000e+00> : vector<20xf32>
    %19 = vector.multi_reduction <add>, %18, %cst_6 [1] : vector<20x200xf32> to vector<20xf32>
    %20 = vector.shape_cast %19 : vector<20xf32> to vector<20x1xf32>
    %21 = arith.addf %15, %20 : vector<20x1xf32>
    %c0_7 = arith.constant 0 : index
    %c0_8 = arith.constant 0 : index
    %22 = vector.load %arg6[%c0_7, %c0_8] : memref<20x1xf32, #tpu.memory_space<vmem>>, vector<20x1xf32>
    tpu.vector_store %arg6[%c0_7, %c0_8], %21 {strides = array<i32>} : memref<20x1xf32, #tpu.memory_space<vmem>>, vector<20x1xf32>,
    %c0_9 = arith.constant 0 : index
    %c0_10 = arith.constant 0 : index
    %23 = vector.load %arg5[%c0_9, %c0_10] : memref<20x1xf32, #tpu.memory_space<vmem>>, vector<20x1xf32>
    tpu.vector_store %arg5[%c0_9, %c0_10], %11 {strides = array<i32>} : memref<20x1xf32, #tpu.memory_space<vmem>>, vector<20x1xf32>,
    %c0_11 = arith.constant 0 : index
    %c0_12 = arith.constant 0 : index
    %24 = vector.load %arg3[%c0_11, %c0_12] : memref<20x1xi32, #tpu.memory_space<vmem>>, vector<20x1xi32>
    %25 = vector.broadcast %24 : vector<20x1xi32> to vector<20x200xi32>
    %26 = arith.cmpi eq, %7, %25 : vector<20x200xi32>
    %cst_13 = arith.constant 0.899999976 : f32
    %cst_14 = arith.constant 5.000000e-04 : f32
    %27 = arith.addf %cst_13, %cst_14 : f32
    %cst_15 = arith.constant 5.000000e-04 : f32
    %28 = vector.broadcast %27 : f32 to vector<20x200xf32>
    %29 = vector.broadcast %cst_15 : f32 to vector<20x200xf32>
    %30 = arith.select %26, %28, %29 : vector<20x200xi1>, vector<20x200xf32>
    %c0_16 = arith.constant 0 : index
    %c0_17 = arith.constant 0 : index
    %31 = vector.load %arg7[%c0_16, %c0_17] : memref<20x1xf32, #tpu.memory_space<vmem>>, vector<20x1xf32>
    %32 = arith.mulf %3, %30 : vector<20x200xf32>
    %cst_18 = arith.constant dense<0.000000e+00> : vector<20xf32>
    %33 = vector.multi_reduction <add>, %32, %cst_18 [1] : vector<20x200xf32> to vector<20xf32>
    %34 = vector.shape_cast %33 : vector<20xf32> to vector<20x1xf32>
    %35 = arith.addf %31, %34 : vector<20x1xf32>
    %c0_19 = arith.constant 0 : index
    %c0_20 = arith.constant 0 : index
    %36 = vector.load %arg7[%c0_19, %c0_20] : memref<20x1xf32, #tpu.memory_space<vmem>>, vector<20x1xf32>
    tpu.vector_store %arg7[%c0_19, %c0_20], %35 {strides = array<i32>} : memref<20x1xf32, #tpu.memory_space<vmem>>, vector<20x1xf32>,
    %c0_i32_21 = arith.constant 0 : i32
    %37 = arith.cmpi eq, %arg1, %c0_i32_21 : i32
    %38 = arith.extui %37 : i1 to i32
    %c0_i32_22 = arith.constant 0 : i32
    %39 = arith.cmpi ne, %38, %c0_i32_22 : i32
    scf.if %39 {
      %c0_23 = arith.constant 0 : index
      %c0_24 = arith.constant 0 : index
      %40 = vector.load %arg5[%c0_23, %c0_24] : memref<20x1xf32, #tpu.memory_space<vmem>>, vector<20x1xf32>
      %c0_25 = arith.constant 0 : index
      %c0_26 = arith.constant 0 : index
      %41 = vector.load %arg6[%c0_25, %c0_26] : memref<20x1xf32, #tpu.memory_space<vmem>>, vector<20x1xf32>
      %42 = math.log %41 : vector<20x1xf32>
      %43 = arith.addf %40, %42 : vector<20x1xf32>
      %cst_27 = arith.constant 1.000000e+00 : f32
      %44 = vector.broadcast %cst_27 : f32 to vector<20x1xf32>
      %45 = arith.mulf %44, %43 : vector<20x1xf32>
      %c0_28 = arith.constant 0 : index
      %c0_29 = arith.constant 0 : index
      %46 = vector.load %arg7[%c0_28, %c0_29] : memref<20x1xf32, #tpu.memory_space<vmem>>, vector<20x1xf32>
      %47 = arith.subf %45, %46 : vector<20x1xf32>
      %48 = vector.shape_cast %47 : vector<20x1xf32> to vector<1x20x1xf32>
      %cst_30 = arith.constant dense<0.000000e+00> : vector<1xf32>
      %49 = vector.multi_reduction <add>, %48, %cst_30 [1, 2] : vector<1x20x1xf32> to vector<1xf32>
      %50 = vector.shape_cast %49 : vector<1xf32> to vector<1x1x1xf32>
      %51 = vector.extract %50[0, 0, 0] : f32 from vector<1x1x1xf32>
      %52 = vector.broadcast %51 : f32 to vector<1x8x128xf32>
      %c0_31 = arith.constant 0 : index
      %c0_32 = arith.constant 0 : index
      %c0_33 = arith.constant 0 : index
      %53 = vector.load %arg4[%c0_31, %c0_32, %c0_33] : memref<1x8x128xf32, #tpu.memory_space<vmem>>, vector<1x8x128xf32>
      tpu.vector_store %arg4[%c0_31, %c0_32, %c0_33], %52 {strides = array<i32>} : memref<1x8x128xf32, #tpu.memory_space<vmem>>, vector<1x8x128xf32>,
    } else {
    }
    return
  }
  func.func @transform_0(%arg0: i32, %arg1: i32) -> (i32, i32) {
    %c0_i32 = arith.constant 0 : i32
    return %arg0, %arg1 : i32, i32
  }
  func.func @transform_1(%arg0: i32, %arg1: i32) -> (i32, i32) {
    %c0_i32 = arith.constant 0 : i32
    %c0_i32_0 = arith.constant 0 : i32
    return %arg0, %c0_i32 : i32, i32
  }
  func.func @transform_2(%arg0: i32, %arg1: i32) -> (i32, i32, i32) {
    %c0_i32 = arith.constant 0 : i32
    %c0_i32_0 = arith.constant 0 : i32
    %c0_i32_1 = arith.constant 0 : i32
    return %arg0, %c0_i32, %c0_i32_0 : i32, i32, i32
  }
}

</mosaic_0001>

<bundles_post_ra>
// kernel: tpu_custom_call.1
= control target key start
LH: loop header
LB: loop body
LE: loop exit
PB: predicated region body
PF: predicated region fallthrough
CT: control target
= control target key end

     0   :  { %7 = vsyncpa [#allocation6], 0  ;;  %s485_s0 = inlined_call_operand.hbm [shape: f32[20,200], index: 0, kind: input, shape index: {}]   ;;  %s486_s1 = inlined_call_operand.vmem [shape: s32[20,1], index: 1, kind: input, shape index: {}]   ;;  %s487_s2 = inlined_call_operand.hbm [shape: f32[1,8,128], index: 2, kind: output, shape index: {}]  }
   0x1   :  { %8 = vsyncpa [#allocation7], 0  ;;  %s13_s11 = sshll.u32 %s485_s0, 4  ;;  %s348_s12 = smov [#allocation5]   ;;  %s14_s11 = int_to_ptr.hbm [resolvable:$true] %s13_s11 }
   0x2   :  { %s15_s13 = sshll.u32 %s348_s12, 4  ;;  %s349_s14 = smov 256   ;;  %s16_s13 = int_to_ptr.vmem [resolvable:$true] %s15_s13 }
   0x3   :  { %s350_s15 = smov 16  }
   0x4   :  { %21 = dma.hbm_to_vmem [thread:$0]  %s14_s11, 768, %s16_s13, [#allocation6], %s349_s14, %s349_s14, %s350_s15  }
   0x5   :  { %344 = dma.done.wait [#allocation6], 768  }
   0x6   :  { %345 = vsyncadd [#allocation6], 4294966528  ;;  %vm32_vm0 = vcmask 7168   ;;  %v351_v0 = vmov -inf   ;;  %vm59_vm1 = vcmask 588800   ;;  %vm68_vm2 = vcmask 1043456  }
   0x7   :  { %33 = vst.msk [vmem:[#allocation2] sm:$0xff] %vm32_vm0, %v351_v0  ;;  %vm70_vm3 = vcmask 584704   ;;  %v376_v1 = vld [vmem:[#allocation5] sm:$0xff]  ;;  %v378_v2 = vld [vmem:[#allocation5 + $0x8] sm:$0xff]  ;;  %v387_v7 = vld [vmem:[#allocation5 + $0x18] sm:$0xff]  ;;  %v352_v14 = vmov 0   ;;  %v49_v36 = vlaneseq }
   0x8   :  { %34 = vst.msk [vmem:[#allocation2 + $0x8] sm:$0xff] %vm32_vm0, %v351_v0  ;;  %v60_v3 = vsel %vm59_vm1, %v378_v2, -inf  ;;  %v382_v4 = vld [vmem:[#allocation5 + $0x20] sm:$0xf]  ;;  %v384_v5 = vld [vmem:[#allocation5 + $0x28] sm:$0xf]  ;;  %269 = vset.pattern.permute.xlu1 %v352_v14  ;;  %270 = vset.pattern.permute.xlu2 %v352_v14 }
   0x9   :  { %v61_v6 = vmax.f32 %v376_v1, %v60_v3  ;;  %v69_v8 = vsel %vm68_vm2, %v382_v4, -inf  ;;  %v71_v9 = vsel %vm70_vm3, %v384_v5, -inf  ;;  %v393_v11 = vld [vmem:[#allocation5 + $0x10] sm:$0xff]  ;;  %v64_v12 = vsel %vm59_vm1, %v387_v7, -inf  ;;  %271 = vset.pattern.permute.xlu0 %v352_v14  ;;  %v150_v16 = vld [vmem:[%s486_s1] sm:$0xff]  ;;  %v151_v29 = vld [vmem:[%s486_s1 + $0x8] sm:$0xff] }
   0xa   :  { %v72_v10 = vmax.f32 %v69_v8, %v71_v9  ;;  %v65_v13 = vmax.f32 %v393_v11, %v64_v12  ;;  %v353_v15 = vmov 0.0   ;;  %vm35_vm4 = vcmask 3072   ;;  %v152_v30 = vld [vmem:[%s486_s1 + $0x10] sm:$0xf]  ;;  %s355_s1 = smov [#allocation8]   ;;  %s249_s24 = sshll.u32 %s487_s2, 4  ;;  %s250_s24 = int_to_ptr.hbm [resolvable:$true] %s249_s24 }
   0xb   :  { %62 = vmax.xlane.f32.xlu0 %v61_v6  ;;  %38 = vst.msk [vmem:[#allocation3 + $0x8] sm:$0xff] %vm32_vm0, %v353_v15  ;;  %v50_v40 = vand.u32 127, %v49_v36  ;;  %v354_v52 = vmov 0.0005   ;;  %s247_s21 = sshll.u32 %s355_s1, 4  ;;  %s248_s21 = int_to_ptr.vmem [resolvable:$true] %s247_s21 }
   0xc   :  { %73 = vmax.xlane.f32.xlu1 %v72_v10  ;;  %37 = vst.msk [vmem:[#allocation3] sm:$0xff] %vm32_vm0, %v353_v15 }
   0xd   :  { %36 = vst.msk [vmem:[#allocation2 + $0x10] sm:$0xf] %vm35_vm4, %v351_v0  ;;  %v51_v46 = vadd.s32 128, %v50_v40 }
   0xe   :  { %39 = vst.msk [vmem:[#allocation3 + $0x10] sm:$0xf] %vm35_vm4, %v353_v15  ;;  %v408_v17 = vld [vmem:[#allocation2] sm:$0xff] }
   0xf   :  { %40 = vst.msk [vmem:[#allocation4] sm:$0xff] %vm32_vm0, %v353_v15  ;;  %v427_v25 = vld [vmem:[#allocation2 + $0x8] sm:$0xff] }
  0x10   :  { %41 = vst.msk [vmem:[#allocation4 + $0x8] sm:$0xff] %vm32_vm0, %v353_v15 }
  0x11   :  { %42 = vst.msk [vmem:[#allocation4 + $0x10] sm:$0xf] %vm35_vm4, %v353_v15 }
  0x13   :  { %66 = vmax.xlane.f32.xlu0 %v65_v13 }
  0x14   :  { %v410_v18 = vld [vmem:[#allocation2 + $0x10] sm:$0xf] }
  0x27   :  { %154 = vperm.xlu0 %271, %v150_v16  }
  0x7e   :  { %v63_v19 = vpop.xlane.xlu0 %62 }
  0x7f   :  { %v413_v20 = vmax.f32 %v408_v17, %v63_v19  ;;  %v74_v21 = vpop.xlane.xlu1 %73 }
  0x80   :  { %v416_v22 = vmax.f32 %v410_v18, %v74_v21 }
  0x81   :  { %v81_v23 = vsub.f32 %v408_v17, %v413_v20  ;;  %147 = vst.msk [vmem:[#allocation2] sm:$0xff] %vm32_vm0, %v413_v20  ;;  %95 = vperm.xlu1 %269, %v413_v20  }
  0x82   :  { %v83_v24 = vsub.f32 %v410_v18, %v416_v22  ;;  %149 = vst.msk [vmem:[#allocation2 + $0x10] sm:$0xf] %vm35_vm4, %v416_v22 }
  0x86   :  { %v67_v26 = vpop.xlane.xlu0 %66 }
  0x87   :  { %v430_v27 = vmax.f32 %v427_v25, %v67_v26 }
  0x89   :  { %v82_v28 = vsub.f32 %v427_v25, %v430_v27  ;;  %148 = vst.msk [vmem:[#allocation2 + $0x8] sm:$0xff] %vm32_vm0, %v430_v27  ;;  %100 = vperm.xlu2 %270, %v430_v27   ;;  %v80_v25 = vld [vmem:[#allocation3 + $0x10] sm:$0xf]  ;;  %v175_v27 = vld [vmem:[#allocation4 + $0x8] sm:$0xff] }
  0x91   :  { %105 = vperm.xlu2 %270, %v416_v22  }
  0x99   :  { %157 = vperm.xlu2 %270, %v151_v29   ;;  %v155_v62 = vpop.permute.xlu0 %154 }
  0x9a   :  { %vm163_vm7 = vcmp.eq.s32.totalorder %v51_v46, %v155_v62  ;;  %vm162_vm8 = vcmp.eq.s32.totalorder %v50_v40, %v155_v62 }
  0x9b   :  { %v168_v10 = vsel %vm162_vm8, 0.9005, %v354_v52 }
  0x9c   :  { %v177_v15 = vmul.f32 %v168_v10, %v376_v1 }
  0xa1   :  { %160 = vperm.xlu2 %270, %v152_v30  }
  0xe3   :  { %v101_v31 = vpop.permute.xlu2 %100 }
  0xe4   :  { %v110_v32 = vsub.f32 %v393_v11, %v101_v31  ;;  %v111_v33 = vsub.f32 %v387_v7, %v101_v31 }
  0xe6   :  { %v118_v34 = vmul.f32 1.442695, %v110_v32  ;;  %v120_v35 = vmul.f32 1.442695, %v111_v33  ;;  %v88_v33 = vmul.f32 1.442695, %v83_v24 }
  0xe8   :  { %272 = vpow2.f32 %v118_v34 }
  0xe9   :  { %274 = vpow2.f32 %v120_v35 }
  0xeb   :  { %v106_v37 = vpop.permute.xlu2 %105 }
  0xec   :  { %v112_v38 = vsub.f32 %v382_v4, %v106_v37  ;;  %v113_v39 = vsub.f32 %v384_v5, %v106_v37  ;;  %v84_v37 = vmul.f32 1.442695, %v81_v23 }
  0xee   :  { %v273_v41 = vpop.eup %272  ;;  %v122_v42 = vmul.f32 1.442695, %v112_v38  ;;  %v124_v43 = vmul.f32 1.442695, %v113_v39 }
  0xef   :  { %v275_v44 = vpop.eup %274 }
  0xf0   :  { %276 = vpow2.f32 %v122_v42  ;;  %v130_v45 = vsel %vm59_vm1, %v275_v44, 0.0 }
  0xf1   :  { %278 = vpow2.f32 %v124_v43  ;;  %v131_v47 = vadd.f32 %v273_v41, %v130_v45  ;;  %v78_v41 = vld [vmem:[#allocation3] sm:$0xff]  ;;  %v174_v43 = vld [vmem:[#allocation4] sm:$0xff] }
  0xf3   :  { %132 = vadd.xlane.f32.xlu1 %v131_v47  ;;  %v158_v48 = vpop.permute.xlu2 %157  ;;  %v96_v49 = vpop.permute.xlu1 %95 }
  0xf4   :  { %vm164_vm5 = vcmp.eq.s32.totalorder %v50_v40, %v158_v48  ;;  %vm165_vm6 = vcmp.eq.s32.totalorder %v51_v46, %v158_v48  ;;  %v108_v50 = vsub.f32 %v376_v1, %v96_v49  ;;  %v109_v51 = vsub.f32 %v378_v2, %v96_v49  ;;  %v176_v49 = vld [vmem:[#allocation4 + $0x10] sm:$0xf] }
  0xf5   :  { %v170_v53 = vsel %vm164_vm5, 0.9005, %v354_v52  ;;  %v171_v54 = vsel %vm165_vm6, 0.9005, %v354_v52  ;;  %v86_v1 = vmul.f32 1.442695, %v82_v28 }
  0xf6   :  { %v277_v55 = vpop.eup %276  ;;  %v180_v56 = vmul.f32 %v171_v54, %v387_v7  ;;  %v114_v57 = vmul.f32 1.442695, %v108_v50  ;;  %v116_v58 = vmul.f32 1.442695, %v109_v51  ;;  %v179_v59 = vmul.f32 %v170_v53, %v393_v11 }
  0xf7   :  { %v279_v60 = vpop.eup %278  ;;  %v134_v61 = vsel %vm68_vm2, %v277_v55, 0.0  ;;  %v169_v7 = vsel %vm163_vm7, 0.9005, %v354_v52  ;;  %v206_v55 = vld [vmem:[#allocation2 + $0x8] sm:$0xff] }
  0xf8   :  { %280 = vpow2.f32 %v114_v57  ;;  %v135_v63 = vsel %vm70_vm3, %v279_v60, 0.0  ;;  %v187_v0 = vsel %vm59_vm1, %v180_v56, 0.0  ;;  %v178_v11 = vmul.f32 %v169_v7, %v378_v2  ;;  %v205_v57 = vld [vmem:[#allocation2] sm:$0xff] }
  0xf9   :  { %282 = vpow2.f32 %v116_v58  ;;  %v136_v3 = vadd.f32 %v135_v63, %v134_v61  ;;  %v188_v6 = vadd.f32 %v187_v0, %v179_v59 }
  0xfa   :  { %v183_v16 = vsel %vm59_vm1, %v178_v11, 0.0  ;;  %284 = vpow2.f32 %v86_v1 }
  0xfb   :  { %137 = vadd.xlane.f32.xlu0 %v136_v3  ;;  %189 = vadd.xlane.f32.xlu1 %v188_v6  ;;  %v161_v13 = vpop.permute.xlu2 %160  ;;  %v184_v26 = vadd.f32 %v183_v16, %v177_v15  ;;  %286 = vpow2.f32 %v88_v33  ;;  %v207_v3 = vld [vmem:[#allocation2 + $0x10] sm:$0xf] }
  0xfc   :  { %vm166_vm9 = vcmp.eq.s32.totalorder %v50_v40, %v161_v13  ;;  %vm167_vm10 = vcmp.eq.s32.totalorder %v51_v46, %v161_v13  ;;  %288 = vpow2.f32 %v84_v37 }
  0xfd   :  { %v172_v19 = vsel %vm166_vm9, 0.9005, %v354_v52  ;;  %v173_v21 = vsel %vm167_vm10, 0.9005, %v354_v52 }
  0xfe   :  { %v281_v8 = vpop.eup %280  ;;  %v181_v29 = vmul.f32 %v172_v19, %v382_v4  ;;  %v182_v30 = vmul.f32 %v173_v21, %v384_v5  ;;  %v79_v4 = vld [vmem:[#allocation3 + $0x8] sm:$0xff] }
  0xff   :  { %v283_v9 = vpop.eup %282 }
 0x100   :  { %v126_v12 = vsel %vm59_vm1, %v283_v9, 0.0  ;;  %v191_v2 = vsel %vm68_vm2, %v181_v29, 0.0  ;;  %v192_v31 = vsel %vm70_vm3, %v182_v30, 0.0  ;;  %v285_v34 = vpop.eup %284 }
 0x101   :  { %v127_v14 = vadd.f32 %v281_v8, %v126_v12  ;;  %v193_v32 = vadd.f32 %v192_v31, %v191_v2  ;;  %v91_v5 = vmul.f32 %v285_v34, %v79_v4  ;;  %v287_v38 = vpop.eup %286 }
 0x102   :  { %v92_v28 = vmul.f32 %v287_v38, %v80_v25  ;;  %v289_v40 = vpop.eup %288 }
 0x103   :  { %128 = vadd.xlane.f32.xlu2 %v127_v14  ;;  %v90_v42 = vmul.f32 %v289_v40, %v78_v41 }
 0x10b   :  { %185 = vadd.xlane.f32.xlu2 %v184_v26 }
 0x113   :  { %194 = vadd.xlane.f32.xlu2 %v193_v32 }
 0x166   :  { %v133_v35 = vpop.xlane.xlu1 %132 }
 0x167   :  { %v140_v36 = vadd.f32 %v133_v35, %v91_v5 }
 0x169   :  { %144 = vst.msk [vmem:[#allocation3 + $0x8] sm:$0xff] %vm32_vm0, %v140_v36 }
 0x16e   :  { %v138_v39 = vpop.xlane.xlu0 %137  ;;  %v190_v18 = vpop.xlane.xlu1 %189 }
 0x16f   :  { %v141_v22 = vadd.f32 %v138_v39, %v92_v28  ;;  %v197_v24 = vadd.f32 %v190_v18, %v175_v27 }
 0x170   :  { %v209_v23 = vld [vmem:[#allocation3 + $0x8] sm:$0xff] }
 0x171   :  { %146 = vst.msk [vmem:[#allocation3 + $0x10] sm:$0xf] %vm35_vm4, %v141_v22  ;;  %290 = vlog2.f32 %v209_v23 }
 0x172   :  { %200 = vst.msk [vmem:[#allocation4 + $0x8] sm:$0xff] %vm32_vm0, %v197_v24 }
 0x176   :  { %v129_v17 = vpop.xlane.xlu2 %128 }
 0x177   :  { %v139_v20 = vadd.f32 %v129_v17, %v90_v42  ;;  %v291_v48 = vpop.eup %290 }
 0x178   :  { %v210_v46 = vld [vmem:[#allocation3 + $0x10] sm:$0xf]  ;;  %v214_v50 = vmul.f32 0.6931472, %v291_v48 }
 0x179   :  { %143 = vst.msk [vmem:[#allocation3] sm:$0xff] %vm32_vm0, %v139_v20  ;;  %v221_v62 = vld [vmem:[#allocation4 + $0x8] sm:$0xff] }
 0x17a   :  { %v218_v58 = vadd.f32 %v214_v50, %v206_v55 }
 0x17c   :  { %v224_v0 = vsub.f32 %v218_v58, %v221_v62 }
 0x17e   :  { %v186_v44 = vpop.xlane.xlu2 %185  ;;  %v227_v10 = vsel %vm32_vm0, %v224_v0, 0.0 }
 0x17f   :  { %v196_v45 = vadd.f32 %v186_v44, %v174_v43 }
 0x180   :  { %v208_v47 = vld [vmem:[#allocation3] sm:$0xff] }
 0x181   :  { %199 = vst.msk [vmem:[#allocation4] sm:$0xff] %vm32_vm0, %v196_v45  ;;  %292 = vlog2.f32 %v208_v47 }
 0x182   :  { %294 = vlog2.f32 %v210_v46 }
 0x186   :  { %v195_v51 = vpop.xlane.xlu2 %194 }
 0x187   :  { %v293_v52 = vpop.eup %292  ;;  %v198_v53 = vadd.f32 %v195_v51, %v176_v49 }
 0x188   :  { %v295_v54 = vpop.eup %294  ;;  %v212_v56 = vmul.f32 0.6931472, %v293_v52  ;;  %v220_v61 = vld [vmem:[#allocation4] sm:$0xff] }
 0x189   :  { %201 = vst.msk [vmem:[#allocation4 + $0x10] sm:$0xf] %vm35_vm4, %v198_v53  ;;  %v216_v60 = vmul.f32 0.6931472, %v295_v54 }
 0x18a   :  { %v217_v59 = vadd.f32 %v212_v56, %v205_v57 }
 0x18b   :  { %v219_v6 = vadd.f32 %v216_v60, %v207_v3 }
 0x18c   :  { %v223_v63 = vsub.f32 %v217_v59, %v220_v61 }
 0x18e   :  { %v226_v7 = vsel %vm32_vm0, %v223_v63, 0.0 }
 0x18f   :  { %v228_v11 = vadd.f32 %v227_v10, %v226_v7 }
 0x190   :  { %v222_v8 = vld [vmem:[#allocation4 + $0x10] sm:$0xf] }
 0x191   :  { %v225_v9 = vsub.f32 %v219_v6, %v222_v8 }
 0x193   :  { %v229_v12 = vsel %vm35_vm4, %v225_v9, 0.0 }
 0x194   :  { %v230_v13 = vadd.f32 %v229_v12, %v228_v11 }
 0x196   :  { %231 = vadd.xlane.f32.xlu1 %v230_v13 }
 0x209   :  { %v232_v14 = vpop.xlane.xlu1 %231 }
 0x20a   :  { %v233_v15 = vrot.slane %v232_v14, 4 }
 0x20c   :  { %v234_v16 = vadd.f32 %v233_v15, %v232_v14 }
 0x20e   :  { %v235_v19 = vrot.slane %v234_v16, 2 }
 0x210   :  { %v236_v21 = vadd.f32 %v235_v19, %v234_v16 }
 0x212   :  { %v237_v26 = vrot.slane %v236_v21, 1 }
 0x214   :  { %v238_v29 = vadd.f32 %v237_v26, %v236_v21 }
 0x216   :  { %259 = vpush %v238_v29 }
 0x247   :  { %s260_s25 = spop %259 }
 0x248   :  { %v240_v30 = vstv %s260_s25 }
 0x249   :  { %241 = vst [vmem:[#allocation8] sm:$0xff] %v240_v30 }
 0x24a   :  { %252 = dma.vmem_to_hbm [thread:$0]  %s248_s21, 128, %s250_s24, [#allocation7]  }
 0x24b   :  { %346 = dma.done.wait [#allocation7], 128  }
 0x24c   :  { %347 = vsyncadd [#allocation7], 4294967168 }
 0x24d   :  { %257 = vsyncpa [#allocation6], 1 }
 0x24e   :  { %258 = vsyncpa [#allocation7], 1 }

</bundles_post_ra>
